<compile_context>
chip_gen: v6e
topology: v6e:2x2x1
jax: 0.10.0
libtpu: 0.0.40
codegen_flags: <defaults>
</compile_context>

<pallas_src>
import jax
import jax.numpy as jnp
from jax.experimental import pallas as pl
from jax.experimental.pallas import tpu as pltpu


def _round_up(x, m):
    return (x + m - 1) // m * m


def _cdiv(a, b):
    return -(-a // b)


def _pick_tile(total, want, align):
    """Largest multiple of `align` <= want that divides `total` (total % align == 0)."""
    t = max(align, min(want, total) // align * align)
    while total % t != 0:
        t -= align
    return t


def _tpu_kind_and_vmem_cap():
    """Device generation string + a safe scoped-VMEM request ceiling (bytes)."""
    kind = ""
    try:
        kind = jax.devices()[0].device_kind.lower()
    except Exception:
        pass
    try:
        capacity = int(pltpu.get_tpu_info().vmem_capacity_bytes)
    except Exception:
        capacity = (64 if "v7" in kind else 128) * 1024 * 1024
    # Leave headroom for Mosaic internal scratch: ~48 MiB on v7x (64 MiB/TC),
    # ~108 MiB on v5e/v6e (128 MiB).
    cap = min(capacity - 16 * 1024 * 1024, int(capacity * 0.85))
    return kind, max(cap, 32 * 1024 * 1024)


# --------------------------- Path A: resident weight ---------------------------

def resblock_kernel(x_ref, wt_ref, b_ref, o_ref):
    # x_ref: (TM, Wp) input tile (pipelined); wt_ref: (Wp, Wp) resident,
    # pre-transposed; b_ref: (1, Wp) resident bias (f32).
    x = x_ref[...]
    y = jnp.dot(x.astype(wt_ref.dtype), wt_ref[...],
                preferred_element_type=jnp.float32)
    y = y + b_ref[...] + x.astype(jnp.float32)          # f32 VPU epilogue
    o_ref[...] = jnp.maximum(y, 0.0).astype(o_ref.dtype)


def _call_resident(x_dma, wt, b_pad, *, tm, wp, bp, out_dtype, cost, vmem_cap):
    grid = (bp // tm,)

    def build(resident_buffers):
        pm = ({"pipeline_mode": pl.Buffered(1)} if resident_buffers == 1 else {})
        vmem_need = (2 * tm * wp * x_dma.dtype.itemsize            # x tiles (double-buffered)
                     + 2 * tm * wp * jnp.dtype(out_dtype).itemsize  # out tiles
                     + resident_buffers * wt.size * wt.dtype.itemsize
                     + resident_buffers * b_pad.size * b_pad.dtype.itemsize)
        vmem_limit = min(vmem_cap, max(32 * 1024 * 1024, int(vmem_need * 1.25)))
        return pl.pallas_call(
            resblock_kernel,
            out_shape=jax.ShapeDtypeStruct((bp, wp), out_dtype),
            grid_spec=pltpu.PrefetchScalarGridSpec(
                num_scalar_prefetch=0,
                grid=grid,
                in_specs=[
                    pl.BlockSpec((tm, wp), lambda i: (i, 0)),        # x tile, pipelined
                    pl.BlockSpec((wp, wp), lambda i: (0, 0), **pm),  # weight, resident
                    pl.BlockSpec((1, wp), lambda i: (0, 0), **pm),   # bias, resident
                ],
                out_specs=pl.BlockSpec((tm, wp), lambda i: (i, 0)),
            ),
            compiler_params=pltpu.CompilerParams(
                dimension_semantics=("parallel",),
                vmem_limit_bytes=vmem_limit),
            cost_estimate=cost,
        )

    try:
        # Single-buffer the constant-index weight/bias (halves resident VMEM).
        return build(1)(x_dma, wt, b_pad)
    except Exception:
        # Fallback if this JAX/Mosaic version rejects Buffered(1).
        return build(2)(x_dma, wt, b_pad)


# ----------------------------- Path B: N/K tiled -------------------------------

def resblock_tiled_kernel(x_ref, wt_ref, xr_ref, b_ref, o_ref, acc_ref):
    # x_ref: (TM,TK) K-slab of x; wt_ref: (TK,TN) weight tile; xr_ref: (TM,TN)
    # residual slab of x; acc_ref: (TM,TN) f32 accumulator.
    k = pl.program_id(2)

    @pl.when(k == 0)
    def _():
        acc_ref[...] = jnp.zeros_like(acc_ref)

    acc_ref[...] += jnp.dot(x_ref[...].astype(wt_ref.dtype), wt_ref[...],
                            preferred_element_type=jnp.float32)

    @pl.when(k == pl.num_programs(2) - 1)
    def _():
        y = acc_ref[...] + b_ref[...] + xr_ref[...].astype(jnp.float32)
        o_ref[...] = jnp.maximum(y, 0.0).astype(o_ref.dtype)


def _call_tiled(x_dma, wt, b_pad, *, tm, tn, tk, wp, bp, out_dtype, cost, vmem_cap):
    grid = (bp // tm, wp // tn, wp // tk)
    vmem_need = (2 * tm * tk * x_dma.dtype.itemsize          # x matmul slabs
                 + 2 * tk * tn * wt.dtype.itemsize           # weight tiles
                 + 2 * tm * tn * x_dma.dtype.itemsize        # residual slabs
                 + 2 * tn * b_pad.dtype.itemsize             # bias tiles
                 + 2 * tm * tn * jnp.dtype(out_dtype).itemsize   # out tiles
                 + tm * tn * 4)                               # f32 accumulator
    vmem_limit = min(vmem_cap, max(32 * 1024 * 1024, int(vmem_need * 1.25)))
    return pl.pallas_call(
        resblock_tiled_kernel,
        out_shape=jax.ShapeDtypeStruct((bp, wp), out_dtype),
        grid_spec=pltpu.PrefetchScalarGridSpec(
            num_scalar_prefetch=0,
            grid=grid,
            in_specs=[
                pl.BlockSpec((tm, tk), lambda i, j, k: (i, k)),  # x, K-slab
                pl.BlockSpec((tk, tn), lambda i, j, k: (k, j)),  # weight tile
                pl.BlockSpec((tm, tn), lambda i, j, k: (i, j)),  # x, residual slab
                pl.BlockSpec((1, tn), lambda i, j, k: (0, j)),   # bias tile
            ],
            out_specs=pl.BlockSpec((tm, tn), lambda i, j, k: (i, j)),
            scratch_shapes=[pltpu.VMEM((tm, tn), jnp.float32)],
        ),
        compiler_params=pltpu.CompilerParams(
            dimension_semantics=("parallel", "parallel", "arbitrary"),
            vmem_limit_bytes=vmem_limit),
        cost_estimate=cost,
    )(x_dma, wt, x_dma, b_pad)


# --------------------------------- Wrapper --------------------------------------

def resblock_forward(x, w, b, *, block_m=512, block_n=256, block_k=512,
                     compute_dtype=jnp.bfloat16, out_dtype=None,
                     force_tiled=False):
    """out = relu(x @ w.T + b + x); w in PyTorch layout (out_features, in_features)."""
    batch, width = x.shape
    assert w.shape == (width, width) and b.shape == (width,)
    out_dtype = x.dtype if out_dtype is None else out_dtype

    kind, vmem_cap = _tpu_kind_and_vmem_cap()
    w_itemsize = jnp.dtype(compute_dtype).itemsize

    # Lane-dense feature padding; align to 256 on v6e/v7x (2x256x256 MXU) when
    # width > 128, keep 128 on v5e / tiny widths (mem-bound, avoid 2x DMA).
    wp = _round_up(width, 128)
    if wp > 128 and wp % 256 == 128 and ("v6" in kind or "v7" in kind):
        wp += 128

    # Batch tile: as large as block_m allows, minimizing padding of the last tile.
    num_m = max(1, _cdiv(batch, block_m))
    tm = _round_up(_cdiv(batch, num_m), 8)
    # Guarantee >=2 grid steps on v7x so the "parallel" axis splits across both TCs.
    if "v7" in kind and batch > 8 and _round_up(batch, tm) // tm < 2:
        tm = _round_up(_cdiv(batch, 2), 8)
    bp = _round_up(batch, tm)

    # One-time wrapper-side transforms (skip pads when already aligned).
    wt = w.T.astype(compute_dtype)
    if wp != width:
        wt = jnp.pad(wt, ((0, wp - width), (0, wp - width)))
    b_pad = b.astype(jnp.float32)
    if wp != width:
        b_pad = jnp.pad(b_pad, (0, wp - width))
    b_pad = b_pad.reshape(1, wp)
    x_pad = x
    if bp != batch or wp != width:
        x_pad = jnp.pad(x_pad, ((0, bp - batch), (0, wp - width)))
    # For bandwidth-bound widths, DMA x in the compute dtype (halves tile bytes);
    # residual is upcast to f32 inside the kernel epilogue.
    x_dma = x_pad
    if width <= 512 and jnp.dtype(compute_dtype) != x.dtype:
        x_dma = x_pad.astype(compute_dtype)

    flops = 2 * bp * wp * wp
    bytes_accessed = (x_dma.size * x_dma.dtype.itemsize
                      + wt.size * wt.dtype.itemsize
                      + b_pad.size * b_pad.dtype.itemsize
                      + bp * wp * jnp.dtype(out_dtype).itemsize)
    cost = pl.CostEstimate(flops=flops, transcendentals=0,
                           bytes_accessed=bytes_accessed)

    resident_weight_bytes = wp * wp * w_itemsize
    use_resident = (not force_tiled) and (resident_weight_bytes <= vmem_cap // 2)

    if use_resident:
        out = _call_resident(x_dma, wt, b_pad, tm=tm, wp=wp, bp=bp,
                             out_dtype=out_dtype, cost=cost, vmem_cap=vmem_cap)
    else:
        align = 256 if (wp % 256 == 0 and ("v6" in kind or "v7" in kind)) else 128
        tn = _pick_tile(wp, block_n, align)
        tk = _pick_tile(wp, block_k, align)
        out = _call_tiled(x_dma, wt, b_pad, tm=tm, tn=tn, tk=tk, wp=wp, bp=bp,
                          out_dtype=out_dtype, cost=cost, vmem_cap=vmem_cap)

    if bp != batch or wp != width:
        out = out[:batch, :width]
    return out


def resblock_reference(x, w, b):
    return jnp.maximum(x @ w.T + b + x, 0.0)


if __name__ == "__main__":
    key = jax.random.PRNGKey(0)
    kx, kw, kb, kx2, kw2, kb2 = jax.random.split(key, 6)

    # ---- Small shape matching the module (batch=8, width=32) ----
    batch, width = 8, 32
    bound = 1.0 / (width ** 0.5)
    w = jax.random.uniform(kw, (width, width), jnp.float32, -bound, bound)
    b = jax.random.uniform(kb, (width,), jnp.float32, -bound, bound)
    x = jax.random.normal(kx, (batch, width), jnp.float32)
    ref = resblock_reference(x, w, b)

    # f32 MXU path: exact semantics check (resident-weight path).
    out_f32 = jax.block_until_ready(
        resblock_forward(x, w, b, compute_dtype=jnp.float32))
    assert out_f32.shape == (batch, width)
    assert jnp.allclose(out_f32, ref, atol=1e-5, rtol=1e-5), \
        "f32 resident path mismatch vs reference"

    # Default bf16-MXU path (f32 accumulation + f32 epilogue); tolerance scales
    # with sqrt(width) since bf16 accumulation error grows with depth.
    out_bf16 = jax.block_until_ready(resblock_forward(x, w, b))
    tol = 5e-2 * max(1.0, (width / 32.0) ** 0.5)
    assert out_bf16.shape == (batch, width)
    assert jnp.allclose(out_bf16, ref, atol=tol, rtol=tol), \
        "bf16 resident path mismatch vs reference"

    # ---- Exercise the N/K-tiled accumulator path (auto-selected for large
    #      widths; forced here at a small shape so it is validated on-device) ----
    batch2, width2 = 64, 256
    bound2 = 1.0 / (width2 ** 0.5)
    w2 = jax.random.uniform(kw2, (width2, width2), jnp.float32, -bound2, bound2)
    b2 = jax.random.uniform(kb2, (width2,), jnp.float32, -bound2, bound2)
    x2 = jax.random.normal(kx2, (batch2, width2), jnp.float32)
    ref2 = resblock_reference(x2, w2, b2)
    out2 = jax.block_until_ready(
        resblock_forward(x2, w2, b2, compute_dtype=jnp.float32,
                         force_tiled=True, block_n=128, block_k=128))
    assert out2.shape == (batch2, width2)
    assert jnp.allclose(out2, ref2, atol=1e-4, rtol=1e-4), \
        "f32 tiled path mismatch vs reference"

    print("KERNEL_OK")
</pallas_src>

<mosaic_0001>
module attributes {stable_mosaic.version = 11 : i64} {
  func.func @resblock_kernel(%arg0: i32, %arg1: memref<8x128xf32, #tpu.memory_space<vmem>>, %arg2: memref<128x128xf32, #tpu.memory_space<vmem>>, %arg3: memref<1x128xf32, #tpu.memory_space<vmem>>, %arg4: memref<8x128xf32, #tpu.memory_space<vmem>>) attributes {dimension_semantics = [#tpu.dimension_semantics<parallel>], iteration_bounds = array<i64: 1>, scalar_prefetch = 0 : i64, scratch_operands = 0 : i64, tpu.core_type = #tpu.core_type<tc>, window_params = [{transform_indices = @transform_0, window_bounds = array<i64: 8, 128>}, {pipeline_mode = #tpu.pipeline_mode<synchronous>, transform_indices = @transform_1, window_bounds = array<i64: 128, 128>}, {pipeline_mode = #tpu.pipeline_mode<synchronous>, transform_indices = @transform_2, window_bounds = array<i64: 1, 128>}, {transform_indices = @transform_3, window_bounds = array<i64: 8, 128>}]} {
    %c0 = arith.constant 0 : index
    %c0_0 = arith.constant 0 : index
    %0 = vector.load %arg1[%c0, %c0_0] : memref<8x128xf32, #tpu.memory_space<vmem>>, vector<8x128xf32>
    %c0_1 = arith.constant 0 : index
    %c0_2 = arith.constant 0 : index
    %1 = vector.load %arg2[%c0_1, %c0_2] : memref<128x128xf32, #tpu.memory_space<vmem>>, vector<128x128xf32>
    %cst = arith.constant dense<0.000000e+00> : vector<8x128xf32>
    %2 = tpu.matmul %0, %1, %cst {dimension_numbers = #tpu.dot_dimension_numbers<[1], [0], [0], [1], [0, 0, 1, 1], [], []>} : vector<8x128xf32>, vector<128x128xf32>, vector<8x128xf32> -> vector<8x128xf32>
    %c0_3 = arith.constant 0 : index
    %c0_4 = arith.constant 0 : index
    %3 = vector.load %arg3[%c0_3, %c0_4] : memref<1x128xf32, #tpu.memory_space<vmem>>, vector<1x128xf32>
    %4 = vector.broadcast %3 : vector<1x128xf32> to vector<8x128xf32>
    %5 = arith.addf %2, %4 : vector<8x128xf32>
    %6 = arith.addf %5, %0 : vector<8x128xf32>
    %cst_5 = arith.constant 0.000000e+00 : f32
    %7 = vector.broadcast %cst_5 : f32 to vector<8x128xf32>
    %8 = arith.maximumf %6, %7 : vector<8x128xf32>
    %c0_6 = arith.constant 0 : index
    %c0_7 = arith.constant 0 : index
    %9 = vector.load %arg4[%c0_6, %c0_7] : memref<8x128xf32, #tpu.memory_space<vmem>>, vector<8x128xf32>
    tpu.vector_store %arg4[%c0_6, %c0_7], %8 {strides = array<i32>} : memref<8x128xf32, #tpu.memory_space<vmem>>, vector<8x128xf32>,
    return
  }
  func.func @transform_0(%arg0: i32) -> (i32, i32) {
    %c0_i32 = arith.constant 0 : i32
    %c0_i32_0 = arith.constant 0 : i32
    return %arg0, %c0_i32 : i32, i32
  }
  func.func @transform_1(%arg0: i32) -> (i32, i32) {
    %c0_i32 = arith.constant 0 : i32
    %c0_i32_0 = arith.constant 0 : i32
    %c0_i32_1 = arith.constant 0 : i32
    return %c0_i32, %c0_i32_0 : i32, i32
  }
  func.func @transform_2(%arg0: i32) -> (i32, i32) {
    %c0_i32 = arith.constant 0 : i32
    %c0_i32_0 = arith.constant 0 : i32
    %c0_i32_1 = arith.constant 0 : i32
    return %c0_i32, %c0_i32_0 : i32, i32
  }
  func.func @transform_3(%arg0: i32) -> (i32, i32) {
    %c0_i32 = arith.constant 0 : i32
    %c0_i32_0 = arith.constant 0 : i32
    return %arg0, %c0_i32 : i32, i32
  }
}

module attributes {stable_mosaic.version = 11 : i64} {
  func.func @resblock_kernel(%arg0: i32, %arg1: memref<8x128xf32, #tpu.memory_space<vmem>>, %arg2: memref<128x128xf32, #tpu.memory_space<vmem>>, %arg3: memref<1x128xf32, #tpu.memory_space<vmem>>, %arg4: memref<8x128xf32, #tpu.memory_space<vmem>>) attributes {dimension_semantics = [#tpu.dimension_semantics<parallel>], iteration_bounds = array<i64: 1>, scalar_prefetch = 0 : i64, scratch_operands = 0 : i64, tpu.core_type = #tpu.core_type<tc>, window_params = [{transform_indices = @transform_0, window_bounds = array<i64: 8, 128>}, {pipeline_mode = #tpu.pipeline_mode<synchronous>, transform_indices = @transform_1, window_bounds = array<i64: 128, 128>}, {pipeline_mode = #tpu.pipeline_mode<synchronous>, transform_indices = @transform_2, window_bounds = array<i64: 1, 128>}, {transform_indices = @transform_3, window_bounds = array<i64: 8, 128>}]} {
    %c0 = arith.constant 0 : index
    %c0_0 = arith.constant 0 : index
    %0 = vector.load %arg1[%c0, %c0_0] : memref<8x128xf32, #tpu.memory_space<vmem>>, vector<8x128xf32>
    %c0_1 = arith.constant 0 : index
    %c0_2 = arith.constant 0 : index
    %1 = vector.load %arg2[%c0_1, %c0_2] : memref<128x128xf32, #tpu.memory_space<vmem>>, vector<128x128xf32>
    %cst = arith.constant dense<0.000000e+00> : vector<8x128xf32>
    %2 = tpu.matmul %0, %1, %cst {dimension_numbers = #tpu.dot_dimension_numbers<[1], [0], [0], [1], [0, 0, 1, 1], [], []>} : vector<8x128xf32>, vector<128x128xf32>, vector<8x128xf32> -> vector<8x128xf32>
    %c0_3 = arith.constant 0 : index
    %c0_4 = arith.constant 0 : index
    %3 = vector.load %arg3[%c0_3, %c0_4] : memref<1x128xf32, #tpu.memory_space<vmem>>, vector<1x128xf32>
    %4 = vector.broadcast %3 : vector<1x128xf32> to vector<8x128xf32>
    %5 = arith.addf %2, %4 : vector<8x128xf32>
    %6 = arith.addf %5, %0 : vector<8x128xf32>
    %cst_5 = arith.constant 0.000000e+00 : f32
    %7 = vector.broadcast %cst_5 : f32 to vector<8x128xf32>
    %8 = arith.maximumf %6, %7 : vector<8x128xf32>
    %c0_6 = arith.constant 0 : index
    %c0_7 = arith.constant 0 : index
    %9 = vector.load %arg4[%c0_6, %c0_7] : memref<8x128xf32, #tpu.memory_space<vmem>>, vector<8x128xf32>
    tpu.vector_store %arg4[%c0_6, %c0_7], %8 {strides = array<i32>} : memref<8x128xf32, #tpu.memory_space<vmem>>, vector<8x128xf32>,
    return
  }
  func.func @transform_0(%arg0: i32) -> (i32, i32) {
    %c0_i32 = arith.constant 0 : i32
    %c0_i32_0 = arith.constant 0 : i32
    return %arg0, %c0_i32 : i32, i32
  }
  func.func @transform_1(%arg0: i32) -> (i32, i32) {
    %c0_i32 = arith.constant 0 : i32
    %c0_i32_0 = arith.constant 0 : i32
    %c0_i32_1 = arith.constant 0 : i32
    return %c0_i32, %c0_i32_0 : i32, i32
  }
  func.func @transform_2(%arg0: i32) -> (i32, i32) {
    %c0_i32 = arith.constant 0 : i32
    %c0_i32_0 = arith.constant 0 : i32
    %c0_i32_1 = arith.constant 0 : i32
    return %c0_i32, %c0_i32_0 : i32, i32
  }
  func.func @transform_3(%arg0: i32) -> (i32, i32) {
    %c0_i32 = arith.constant 0 : i32
    %c0_i32_0 = arith.constant 0 : i32
    return %arg0, %c0_i32 : i32, i32
  }
}

</mosaic_0001>

<bundles_post_ra>
// kernel: tpu_custom_call.1
= control target key start
LH: loop header
LB: loop body
LE: loop exit
PB: predicated region body
PF: predicated region fallthrough
CT: control target
= control target key end

     0   :  { %8 = vsyncpa [#allocation3], 0  ;;  %s319_s0 = inlined_call_operand.hbm [shape: f32[8,128], index: 0, kind: input, shape index: {}]   ;;  %s320_s1 = inlined_call_operand.hbm [shape: f32[128,128], index: 1, kind: input, shape index: {}]   ;;  %s321_s2 = inlined_call_operand.vmem [shape: f32[1,128], index: 2, kind: input, shape index: {}]   ;;  %s322_s3 = inlined_call_operand.hbm [shape: f32[8,128], index: 3, kind: output, shape index: {}]  }
   0x1   :  { %9 = vsyncpa [#allocation6], 0 }
   0x2   :  { %10 = vsyncpa [#allocation4], 0  ;;  %s280_s12 = smov [#allocation2]   ;;  %s281_s14 = smov [#allocation5]  }
   0x3   :  { %s17_s13 = sshll.u32 %s280_s12, 4  ;;  %s26_s15 = sshll.u32 %s281_s14, 4  ;;  %s18_s13 = int_to_ptr.vmem [resolvable:$true] %s17_s13  ;;  %s27_s15 = int_to_ptr.vmem [resolvable:$true] %s26_s15 }
   0x4   :  { %s222_s16 = scalar_lea.vmem %s18_s13, 128  ;;  %p227_p1 = scmp.lt.s32.totalorder %s18_s13, %s18_s13 }
   0x5   :  { %p223_p0 = scmp.ne.s32.totalorder %s18_s13, %s222_s16  ;;  %p228_p2 = scmp.lt.s32.totalorder %s222_s16, %s222_s16 }
   0x7   :  { %p229_p3 = por %p228_p2, %p227_p1 }
   0x9   :  { %p230_p4 = pnand %p229_p3, %p223_p0 }
   0xb   :  { %233 = shalt.err (!%p230_p4)
}
   0xc   :  { %20 = dma.hbm_to_vmem [thread:$0]  %s319_s0, 128, %s18_s13, [#allocation3]  }
   0xd   :  { %s242_s19 = scalar_lea.vmem %s27_s15, 2048  ;;  %p247_p6 = scmp.lt.s32.totalorder %s27_s15, %s27_s15 }
   0xe   :  { %p243_p5 = scmp.ne.s32.totalorder %s27_s15, %s242_s19  ;;  %p248_p7 = scmp.lt.s32.totalorder %s242_s19, %s242_s19 }
  0x10   :  { %p249_p8 = por %p248_p7, %p247_p6 }
  0x12   :  { %p250_p9 = pnand %p249_p8, %p243_p5 }
  0x14   :  { %253 = shalt.err (!%p250_p9)
}
  0x15   :  { %s282_s20 = smov 128   ;;  %s283_s21 = smov 8  }
  0x16   :  { %32 = dma.hbm_to_vmem [thread:$0]  %s320_s1, 2048, %s27_s15, [#allocation6], %s282_s20, %s282_s20, %s283_s21  }
  0x17   :  { %274 = dma.done.wait [#allocation3], 128  }
  0x18   :  { %275 = vsyncadd [#allocation3], 4294967168 }
  0x19   :  { %276 = dma.done.wait [#allocation6], 2048  }
  0x1a   :  { %277 = vsyncadd [#allocation6], 4294965248  ;;  %v284_v0 = vmov 0.0   ;;  %vm285_vm0 = vmmov 0   ;;  %v57_v1 = vld [vmem:[#allocation5 + $0x78] sm:$0xff]  ;;  %v56_v2 = vld [vmem:[#allocation5 + $0x70] sm:$0xff] }
  0x1b   :  { %172 = vmatprep.subr.mxu0 %v284_v0  ;;  %204 = vmatprep.mubr.msk.f32.mxu0 %vm285_vm0, %v284_v0  ;;  %v55_v3 = vld [vmem:[#allocation5 + $0x68] sm:$0xff]  ;;  %v54_v4 = vld [vmem:[#allocation5 + $0x60] sm:$0xff]  ;;  %v53_v5 = vld [vmem:[#allocation5 + $0x58] sm:$0xff]  ;;  %s286_s24 = smov [#allocation7]  }
  0x1c   :  { %173 = vmatpush3.msra.mxu0 %v57_v1  ;;  %v52_v6 = vld [vmem:[#allocation5 + $0x50] sm:$0xff]  ;;  %v51_v7 = vld [vmem:[#allocation5 + $0x48] sm:$0xff]  ;;  %v50_v8 = vld [vmem:[#allocation5 + $0x40] sm:$0xff]  ;;  %s144_s25 = sshll.u32 %s286_s24, 4  ;;  %s145_s25 = int_to_ptr.vmem [resolvable:$true] %s144_s25 }
  0x1d   :  { %174 = vmatprep.subr.mxu0 %v284_v0  ;;  %v49_v9 = vld [vmem:[#allocation5 + $0x38] sm:$0xff]  ;;  %v48_v10 = vld [vmem:[#allocation5 + $0x30] sm:$0xff]  ;;  %v47_v11 = vld [vmem:[#allocation5 + $0x28] sm:$0xff]  ;;  %s254_s26 = scalar_lea.vmem %s145_s25, 128  ;;  %p259_p11 = scmp.lt.s32.totalorder %s145_s25, %s145_s25 }
  0x1e   :  { %175 = vmatpush3.msra.mxu0 %v56_v2  ;;  %v46_v12 = vld [vmem:[#allocation5 + $0x20] sm:$0xff]  ;;  %v45_v13 = vld [vmem:[#allocation5 + $0x18] sm:$0xff]  ;;  %v44_v14 = vld [vmem:[#allocation5 + $0x10] sm:$0xff]  ;;  %p255_p10 = scmp.ne.s32.totalorder %s145_s25, %s254_s26  ;;  %p260_p12 = scmp.lt.s32.totalorder %s254_s26, %s254_s26 }
  0x1f   :  { %176 = vmatprep.subr.mxu0 %v284_v0  ;;  %v43_v15 = vld [vmem:[#allocation5 + $0x8] sm:$0xff]  ;;  %v42_v16 = vld [vmem:[#allocation5] sm:$0xff]  ;;  %v41_v17 = vld [vmem:[#allocation2] sm:$0xff] }
  0x20   :  { %177 = vmatpush3.msra.mxu0 %v55_v3  ;;  %v154_v18 = vld [vmem:[%s321_s2] ss:$0 sm:$0xff]  ;;  %p261_p13 = por %p260_p12, %p259_p11 }
  0x21   :  { %178 = vmatprep.subr.mxu0 %v284_v0 }
  0x22   :  { %179 = vmatpush3.msra.mxu0 %v54_v4  ;;  %p262_p0 = pnand %p261_p13, %p255_p10 }
  0x23   :  { %180 = vmatprep.subr.mxu0 %v284_v0 }
  0x24   :  { %181 = vmatpush3.msra.mxu0 %v53_v5 }
  0x25   :  { %182 = vmatprep.subr.mxu0 %v284_v0 }
  0x26   :  { %183 = vmatpush3.msra.mxu0 %v52_v6 }
  0x27   :  { %184 = vmatprep.subr.mxu0 %v284_v0 }
  0x28   :  { %185 = vmatpush3.msra.mxu0 %v51_v7 }
  0x29   :  { %186 = vmatprep.subr.mxu0 %v284_v0 }
  0x2a   :  { %187 = vmatpush3.msra.mxu0 %v50_v8 }
  0x2b   :  { %188 = vmatprep.subr.mxu0 %v284_v0 }
  0x2c   :  { %189 = vmatpush3.msra.mxu0 %v49_v9 }
  0x2d   :  { %190 = vmatprep.subr.mxu0 %v284_v0 }
  0x2e   :  { %191 = vmatpush3.msra.mxu0 %v48_v10 }
  0x2f   :  { %192 = vmatprep.subr.mxu0 %v284_v0 }
  0x30   :  { %193 = vmatpush3.msra.mxu0 %v47_v11 }
  0x31   :  { %194 = vmatprep.subr.mxu0 %v284_v0 }
  0x32   :  { %195 = vmatpush3.msra.mxu0 %v46_v12 }
  0x33   :  { %196 = vmatprep.subr.mxu0 %v284_v0 }
  0x34   :  { %197 = vmatpush3.msra.mxu0 %v45_v13 }
  0x35   :  { %198 = vmatprep.subr.mxu0 %v284_v0 }
  0x36   :  { %199 = vmatpush3.msra.mxu0 %v44_v14 }
  0x37   :  { %200 = vmatprep.subr.mxu0 %v284_v0 }
  0x38   :  { %201 = vmatpush3.msra.mxu0 %v43_v15 }
  0x39   :  { %202 = vmatprep.subr.mxu0 %v284_v0 }
  0x3a   :  { %203 = vmatpush3.msra.mxu0 %v42_v16 }
  0x3b   :  { %205 = vmatmul.mubr.f32.vlgmr.msra.gmra.mxu0 %v41_v17 }
  0xfb   :  { %v131_v19 = vpop.f32.mrf.mxu0 }
  0xfc   :  { %v132_v20 = vadd.f32 %v154_v18, %v131_v19 }
  0xfd   :  { %v206_v21 = vpop.f32.mrf.mxu0 }
  0xfe   :  { %v135_v22 = vadd.f32 %v132_v20, %v41_v17 }
 0x100   :  { %v136_v23 = vmax.f32 %v135_v22, 0.0 }
 0x102   :  { %137 = vst [vmem:[#allocation7] sm:$0xff] %v136_v23 }
 0x103   :  { %265 = shalt.err (!%p262_p0)
}
 0x104   :  { %147 = dma.vmem_to_hbm [thread:$0]  %s145_s25, 128, %s322_s3, [#allocation4]  }
 0x105   :  { %278 = dma.done.wait [#allocation4], 128  }
 0x106   :  { %279 = vsyncadd [#allocation4], 4294967168 }
 0x107   :  { %151 = vsyncpa [#allocation3], 1 }
 0x108   :  { %152 = vsyncpa [#allocation6], 1 }
 0x109   :  { %153 = vsyncpa [#allocation4], 1 }

// kernel: tpu_custom_call.1
= control target key start
LH: loop header
LB: loop body
LE: loop exit
PB: predicated region body
PF: predicated region fallthrough
CT: control target
= control target key end

     0   :  { %8 = vsyncpa [#allocation3], 0  ;;  %s319_s0 = inlined_call_operand.hbm [shape: f32[8,128], index: 0, kind: input, shape index: {}]   ;;  %s320_s1 = inlined_call_operand.hbm [shape: f32[128,128], index: 1, kind: input, shape index: {}]   ;;  %s321_s2 = inlined_call_operand.vmem [shape: f32[1,128], index: 2, kind: input, shape index: {}]   ;;  %s322_s3 = inlined_call_operand.hbm [shape: f32[8,128], index: 3, kind: output, shape index: {}]  }
   0x1   :  { %9 = vsyncpa [#allocation6], 0 }
   0x2   :  { %10 = vsyncpa [#allocation4], 0  ;;  %s280_s12 = smov [#allocation2]   ;;  %s281_s14 = smov [#allocation5]  }
   0x3   :  { %s17_s13 = sshll.u32 %s280_s12, 4  ;;  %s26_s15 = sshll.u32 %s281_s14, 4  ;;  %s18_s13 = int_to_ptr.vmem [resolvable:$true] %s17_s13  ;;  %s27_s15 = int_to_ptr.vmem [resolvable:$true] %s26_s15 }
   0x4   :  { %s222_s16 = scalar_lea.vmem %s18_s13, 128  ;;  %p227_p1 = scmp.lt.s32.totalorder %s18_s13, %s18_s13 }
   0x5   :  { %p223_p0 = scmp.ne.s32.totalorder %s18_s13, %s222_s16  ;;  %p228_p2 = scmp.lt.s32.totalorder %s222_s16, %s222_s16 }
   0x7   :  { %p229_p3 = por %p228_p2, %p227_p1 }
   0x9   :  { %p230_p4 = pnand %p229_p3, %p223_p0 }
   0xb   :  { %233 = shalt.err (!%p230_p4)
}
   0xc   :  { %20 = dma.hbm_to_vmem [thread:$0]  %s319_s0, 128, %s18_s13, [#allocation3]  }
   0xd   :  { %s242_s19 = scalar_lea.vmem %s27_s15, 2048  ;;  %p247_p6 = scmp.lt.s32.totalorder %s27_s15, %s27_s15 }
   0xe   :  { %p243_p5 = scmp.ne.s32.totalorder %s27_s15, %s242_s19  ;;  %p248_p7 = scmp.lt.s32.totalorder %s242_s19, %s242_s19 }
  0x10   :  { %p249_p8 = por %p248_p7, %p247_p6 }
  0x12   :  { %p250_p9 = pnand %p249_p8, %p243_p5 }
  0x14   :  { %253 = shalt.err (!%p250_p9)
}
  0x15   :  { %s282_s20 = smov 128   ;;  %s283_s21 = smov 8  }
  0x16   :  { %32 = dma.hbm_to_vmem [thread:$0]  %s320_s1, 2048, %s27_s15, [#allocation6], %s282_s20, %s282_s20, %s283_s21  }
  0x17   :  { %274 = dma.done.wait [#allocation3], 128  }
  0x18   :  { %275 = vsyncadd [#allocation3], 4294967168 }
  0x19   :  { %276 = dma.done.wait [#allocation6], 2048  }
  0x1a   :  { %277 = vsyncadd [#allocation6], 4294965248  ;;  %v284_v0 = vmov 0.0   ;;  %vm285_vm0 = vmmov 0   ;;  %v57_v1 = vld [vmem:[#allocation5 + $0x78] sm:$0xff]  ;;  %v56_v2 = vld [vmem:[#allocation5 + $0x70] sm:$0xff] }
  0x1b   :  { %172 = vmatprep.subr.mxu0 %v284_v0  ;;  %204 = vmatprep.mubr.msk.f32.mxu0 %vm285_vm0, %v284_v0  ;;  %v55_v3 = vld [vmem:[#allocation5 + $0x68] sm:$0xff]  ;;  %v54_v4 = vld [vmem:[#allocation5 + $0x60] sm:$0xff]  ;;  %v53_v5 = vld [vmem:[#allocation5 + $0x58] sm:$0xff]  ;;  %s286_s24 = smov [#allocation7]  }
  0x1c   :  { %173 = vmatpush3.msra.mxu0 %v57_v1  ;;  %v52_v6 = vld [vmem:[#allocation5 + $0x50] sm:$0xff]  ;;  %v51_v7 = vld [vmem:[#allocation5 + $0x48] sm:$0xff]  ;;  %v50_v8 = vld [vmem:[#allocation5 + $0x40] sm:$0xff]  ;;  %s144_s25 = sshll.u32 %s286_s24, 4  ;;  %s145_s25 = int_to_ptr.vmem [resolvable:$true] %s144_s25 }
  0x1d   :  { %174 = vmatprep.subr.mxu0 %v284_v0  ;;  %v49_v9 = vld [vmem:[#allocation5 + $0x38] sm:$0xff]  ;;  %v48_v10 = vld [vmem:[#allocation5 + $0x30] sm:$0xff]  ;;  %v47_v11 = vld [vmem:[#allocation5 + $0x28] sm:$0xff]  ;;  %s254_s26 = scalar_lea.vmem %s145_s25, 128  ;;  %p259_p11 = scmp.lt.s32.totalorder %s145_s25, %s145_s25 }
  0x1e   :  { %175 = vmatpush3.msra.mxu0 %v56_v2  ;;  %v46_v12 = vld [vmem:[#allocation5 + $0x20] sm:$0xff]  ;;  %v45_v13 = vld [vmem:[#allocation5 + $0x18] sm:$0xff]  ;;  %v44_v14 = vld [vmem:[#allocation5 + $0x10] sm:$0xff]  ;;  %p255_p10 = scmp.ne.s32.totalorder %s145_s25, %s254_s26  ;;  %p260_p12 = scmp.lt.s32.totalorder %s254_s26, %s254_s26 }
  0x1f   :  { %176 = vmatprep.subr.mxu0 %v284_v0  ;;  %v43_v15 = vld [vmem:[#allocation5 + $0x8] sm:$0xff]  ;;  %v42_v16 = vld [vmem:[#allocation5] sm:$0xff]  ;;  %v41_v17 = vld [vmem:[#allocation2] sm:$0xff] }
  0x20   :  { %177 = vmatpush3.msra.mxu0 %v55_v3  ;;  %v154_v18 = vld [vmem:[%s321_s2] ss:$0 sm:$0xff]  ;;  %p261_p13 = por %p260_p12, %p259_p11 }
  0x21   :  { %178 = vmatprep.subr.mxu0 %v284_v0 }
  0x22   :  { %179 = vmatpush3.msra.mxu0 %v54_v4  ;;  %p262_p0 = pnand %p261_p13, %p255_p10 }
  0x23   :  { %180 = vmatprep.subr.mxu0 %v284_v0 }
  0x24   :  { %181 = vmatpush3.msra.mxu0 %v53_v5 }
  0x25   :  { %182 = vmatprep.subr.mxu0 %v284_v0 }
  0x26   :  { %183 = vmatpush3.msra.mxu0 %v52_v6 }
  0x27   :  { %184 = vmatprep.subr.mxu0 %v284_v0 }
  0x28   :  { %185 = vmatpush3.msra.mxu0 %v51_v7 }
  0x29   :  { %186 = vmatprep.subr.mxu0 %v284_v0 }
  0x2a   :  { %187 = vmatpush3.msra.mxu0 %v50_v8 }
  0x2b   :  { %188 = vmatprep.subr.mxu0 %v284_v0 }
  0x2c   :  { %189 = vmatpush3.msra.mxu0 %v49_v9 }
  0x2d   :  { %190 = vmatprep.subr.mxu0 %v284_v0 }
  0x2e   :  { %191 = vmatpush3.msra.mxu0 %v48_v10 }
  0x2f   :  { %192 = vmatprep.subr.mxu0 %v284_v0 }
  0x30   :  { %193 = vmatpush3.msra.mxu0 %v47_v11 }
  0x31   :  { %194 = vmatprep.subr.mxu0 %v284_v0 }
  0x32   :  { %195 = vmatpush3.msra.mxu0 %v46_v12 }
  0x33   :  { %196 = vmatprep.subr.mxu0 %v284_v0 }
  0x34   :  { %197 = vmatpush3.msra.mxu0 %v45_v13 }
  0x35   :  { %198 = vmatprep.subr.mxu0 %v284_v0 }
  0x36   :  { %199 = vmatpush3.msra.mxu0 %v44_v14 }
  0x37   :  { %200 = vmatprep.subr.mxu0 %v284_v0 }
  0x38   :  { %201 = vmatpush3.msra.mxu0 %v43_v15 }
  0x39   :  { %202 = vmatprep.subr.mxu0 %v284_v0 }
  0x3a   :  { %203 = vmatpush3.msra.mxu0 %v42_v16 }
  0x3b   :  { %205 = vmatmul.mubr.f32.vlgmr.msra.gmra.mxu0 %v41_v17 }
  0xfb   :  { %v131_v19 = vpop.f32.mrf.mxu0 }
  0xfc   :  { %v132_v20 = vadd.f32 %v154_v18, %v131_v19 }
  0xfd   :  { %v206_v21 = vpop.f32.mrf.mxu0 }
  0xfe   :  { %v135_v22 = vadd.f32 %v132_v20, %v41_v17 }
 0x100   :  { %v136_v23 = vmax.f32 %v135_v22, 0.0 }
 0x102   :  { %137 = vst [vmem:[#allocation7] sm:$0xff] %v136_v23 }
 0x103   :  { %265 = shalt.err (!%p262_p0)
}
 0x104   :  { %147 = dma.vmem_to_hbm [thread:$0]  %s145_s25, 128, %s322_s3, [#allocation4]  }
 0x105   :  { %278 = dma.done.wait [#allocation4], 128  }
 0x106   :  { %279 = vsyncadd [#allocation4], 4294967168 }
 0x107   :  { %151 = vsyncpa [#allocation3], 1 }
 0x108   :  { %152 = vsyncpa [#allocation6], 1 }
 0x109   :  { %153 = vsyncpa [#allocation4], 1 }

</bundles_post_ra>
